<compile_context>
chip_gen: v7x
topology: tpu7x:2x2x1
jax: 0.10.0
libtpu: 0.0.40
codegen_flags: <defaults>
</compile_context>

<pallas_src>
import functools
import math

import jax
import jax.numpy as jnp
from jax.experimental import pallas as pl
from jax.experimental.pallas import tpu as pltpu


def _layer_norm_kernel(x_ref, g_ref, b_ref, o_ref, *, eps, inv_n):
    x = x_ref[...]
    if x.dtype != jnp.float32:
        x = x.astype(jnp.float32)                    # keep stats in f32
    # sum * (1/n_f) == mean, but stays correct when the feature axis was
    # zero-padded to a lane-dense 128 multiple in the wrapper.
    mean = jnp.sum(x, axis=-1, keepdims=True) * inv_n
    # Reference quirk: "std" is literally the mean again -> denom = mean + eps.
    inv = pl.reciprocal(mean + eps, approx=True)     # EUP slot; frees VALU
    nm = (x - mean) * inv
    out = nm * g_ref[...] + b_ref[...]
    o_ref[...] = out.astype(o_ref.dtype)


def _tpu_vmem_info():
    """(per-TC VMEM bytes, likely-2-TensorCore-chip) with safe fallbacks."""
    try:
        cap = int(pltpu.get_tpu_info().vmem_capacity_bytes)
        two_tc = cap <= (96 << 20)        # 64 MiB per-TC parts (v7x) have 2 TCs
    except Exception:
        cap = 64 << 20                    # conservative sizing default
        two_tc = False                    # perf-only heuristic; assume 1 TC
    return cap, two_tc


def _choose_tile_rows(rows, n_f, dtype, vmem_capacity, two_tensorcores):
    """Biggest row tile whose f32 working set is ~capacity/16, respecting
    sublane granularity; optionally split once so both v7x TCs get work."""
    itemsize = jnp.dtype(dtype).itemsize
    if itemsize >= 4:
        sub = 8          # f32 sublane tile
    elif itemsize == 2:
        sub = 16         # bf16
    else:
        sub = 32         # int8 / fp8
    target_f32_tile_bytes = max(2 << 20, vmem_capacity // 16)
    max_rows = max(sub, target_f32_tile_bytes // (n_f * 4))
    tile = min(max(rows, 1), max_rows)
    tile = max(sub, (tile // sub) * sub)
    # Only on 2-TensorCore chips (v7x): ensure >= 2 grid steps so the
    # "parallel" axis shards across both cores, but only if each half-tile is
    # still large enough (>= 512 rows) that per-step overhead stays negligible.
    if two_tensorcores and rows > sub:
        num_tiles = -(-rows // tile)
        if num_tiles < 2 and rows // 2 >= 512:
            half = (rows + 1) // 2
            tile = max(sub, (half // sub) * sub)
    return int(tile)


def layer_norm(x, gamma, beta, eps=1e-9, *, tile_rows=None):
    """Pallas layer_norm matching the PyTorch module's forward exactly."""
    orig_shape = x.shape
    n_f = orig_shape[-1]
    rows = int(math.prod(orig_shape[:-1])) if len(orig_shape) > 1 else 1

    x2 = x.reshape(rows, n_f)
    g2 = gamma.reshape(1, n_f)
    b2 = beta.reshape(1, n_f)

    # Lane-dense feature axis: pad to a multiple of 128 only when needed.
    padded_nf = n_f
    if n_f % 128 != 0:
        padded_nf = int(pl.cdiv(n_f, 128)) * 128
        pad_f = padded_nf - n_f
        x2 = jnp.pad(x2, ((0, 0), (0, pad_f)))   # zeros don't skew sum/n_f
        g2 = jnp.pad(g2, ((0, 0), (0, pad_f)))   # zero gamma -> padded out = beta_pad
        b2 = jnp.pad(b2, ((0, 0), (0, pad_f)))   # zero beta  -> padded out = 0

    vmem_capacity, two_tc = _tpu_vmem_info()
    if tile_rows is None:
        tile_rows = _choose_tile_rows(rows, padded_nf, x.dtype,
                                      vmem_capacity, two_tc)

    # cdiv grid; a non-divisible last block uses Pallas edge-block handling
    # (no wrapper pad/slice -> no extra HBM passes). Garbage rows in the
    # padded tail are computed but never written back.
    num_tiles = int(pl.cdiv(rows, tile_rows))
    grid = (num_tiles,)

    # Generation-aware scoped-VMEM budget: double-buffered in+out tiles
    # (native dtype) + f32 temporaries + resident params, with headroom under
    # the queried per-TC physical VMEM (64 MiB on v7x, 128 MiB on v5e/v6e).
    itemsize = jnp.dtype(x.dtype).itemsize
    tile_io_bytes = tile_rows * padded_nf * itemsize
    footprint = (2 * 2 * tile_io_bytes                         # 2-buffered in + out
                 + 3 * tile_rows * padded_nf * 4               # f32 temporaries
                 + 4 * padded_nf * jnp.dtype(g2.dtype).itemsize)
    cap = max(16 << 20, vmem_capacity - (16 << 20))            # compiler headroom
    vmem_limit = int(max(16 << 20, min(cap, 2 * footprint)))
    if footprint > vmem_limit:
        # Degenerate huge-n_f case: raise toward physical capacity instead of
        # letting the clamp fall below what the kernel actually needs.
        vmem_limit = int(min(vmem_capacity - (8 << 20), footprint + (4 << 20)))

    out2 = pl.pallas_call(
        functools.partial(_layer_norm_kernel, eps=eps, inv_n=1.0 / float(n_f)),
        out_shape=jax.ShapeDtypeStruct((rows, padded_nf), x.dtype),
        grid_spec=pltpu.PrefetchScalarGridSpec(
            num_scalar_prefetch=0,
            grid=grid,
            in_specs=[
                pl.BlockSpec((tile_rows, padded_nf), lambda i: (i, 0)),  # x tile
                pl.BlockSpec((1, padded_nf), lambda i: (0, 0)),          # gamma (resident)
                pl.BlockSpec((1, padded_nf), lambda i: (0, 0)),          # beta  (resident)
            ],
            out_specs=pl.BlockSpec((tile_rows, padded_nf), lambda i: (i, 0)),
        ),
        compiler_params=pltpu.CompilerParams(
            dimension_semantics=("parallel",),
            vmem_limit_bytes=vmem_limit,
        ),
    )(x2, g2, b2)

    if padded_nf != n_f:
        out2 = out2[:, :n_f]
    return out2.reshape(orig_shape)


def layer_norm_ref(x, gamma, beta, eps=1e-9):
    """Pure-JAX reference reproducing the PyTorch forward (incl. std=mean quirk)."""
    mean = jnp.mean(x, axis=-1, keepdims=True)
    std = jnp.mean(x, axis=-1, keepdims=True)
    nm = (x - mean) / (std + eps)
    return nm * gamma + beta


if __name__ == "__main__":
    eps = 1e-9
    key = jax.random.PRNGKey(0)

    # n_f = 128 -> lane-dense fast path (no feature padding).
    batch, seq, n_f = 2, 8, 128
    x = jax.random.normal(key, (batch, seq, n_f), dtype=jnp.float32)
    gamma = jnp.ones((n_f,), dtype=jnp.float32)   # matches nn.Parameter(torch.ones)
    beta = jnp.zeros((n_f,), dtype=jnp.float32)   # matches nn.Parameter(torch.zeros)

    out = jax.block_until_ready(layer_norm(x, gamma, beta, eps=eps))
    ref = layer_norm_ref(x, gamma, beta, eps=eps)
    assert out.shape == x.shape and out.dtype == x.dtype
    # approx=True reciprocal (EUP) carries ~2^-12 relative error.
    assert jnp.allclose(out, ref, rtol=5e-3, atol=2e-4), "mismatch vs reference"

    # Ragged row count (15 rows) -> exercises the Pallas partial edge-block
    # path (no wrapper pad/slice anymore).
    key2 = jax.random.fold_in(key, 1)
    x_tail = jax.random.normal(key2, (3, 5, n_f), dtype=jnp.float32)
    out_tail = jax.block_until_ready(layer_norm(x_tail, gamma, beta, eps=eps))
    ref_tail = layer_norm_ref(x_tail, gamma, beta, eps=eps)
    assert out_tail.shape == x_tail.shape
    assert jnp.allclose(out_tail, ref_tail, rtol=5e-3, atol=2e-4), "tail mismatch"

    # Non-128-multiple feature dim -> lane-dense padding path (sum/n_f mean,
    # zero-padded gamma/beta, padded lanes sliced off).
    n_f2 = 96
    key3 = jax.random.fold_in(key, 2)
    x_small = jax.random.normal(key3, (2, 8, n_f2), dtype=jnp.float32)
    gamma2 = jnp.ones((n_f2,), dtype=jnp.float32)
    beta2 = jnp.zeros((n_f2,), dtype=jnp.float32)
    out_small = jax.block_until_ready(layer_norm(x_small, gamma2, beta2, eps=eps))
    ref_small = layer_norm_ref(x_small, gamma2, beta2, eps=eps)
    assert out_small.shape == x_small.shape
    assert jnp.allclose(out_small, ref_small, rtol=5e-3, atol=2e-4), "ragged-nf mismatch"

    print("KERNEL_OK")
</pallas_src>

<mosaic_0001>
module attributes {stable_mosaic.version = 11 : i64} {
  func.func @_layer_norm_kernel(%arg0: i32, %arg1: memref<16x128xf32, #tpu.memory_space<vmem>>, %arg2: memref<1x128xf32, #tpu.memory_space<vmem>>, %arg3: memref<1x128xf32, #tpu.memory_space<vmem>>, %arg4: memref<16x128xf32, #tpu.memory_space<vmem>>) attributes {dimension_semantics = [#tpu.dimension_semantics<parallel>], iteration_bounds = array<i64: 1>, scalar_prefetch = 0 : i64, scratch_operands = 0 : i64, tpu.core_type = #tpu.core_type<tc>, window_params = [{transform_indices = @transform_0, window_bounds = array<i64: 16, 128>}, {pipeline_mode = #tpu.pipeline_mode<synchronous>, transform_indices = @transform_1, window_bounds = array<i64: 1, 128>}, {pipeline_mode = #tpu.pipeline_mode<synchronous>, transform_indices = @transform_2, window_bounds = array<i64: 1, 128>}, {transform_indices = @transform_3, window_bounds = array<i64: 16, 128>}]} {
    %c0 = arith.constant 0 : index
    %c0_0 = arith.constant 0 : index
    %0 = vector.load %arg1[%c0, %c0_0] : memref<16x128xf32, #tpu.memory_space<vmem>>, vector<16x128xf32>
    %cst = arith.constant dense<0.000000e+00> : vector<16xf32>
    %1 = vector.multi_reduction <add>, %0, %cst [1] : vector<16x128xf32> to vector<16xf32>
    %2 = vector.shape_cast %1 : vector<16xf32> to vector<16x1xf32>
    %cst_1 = arith.constant 7.812500e-03 : f32
    %3 = vector.broadcast %cst_1 : f32 to vector<16x1xf32>
    %4 = arith.mulf %2, %3 : vector<16x1xf32>
    %cst_2 = arith.constant 9.99999971E-10 : f32
    %5 = vector.broadcast %cst_2 : f32 to vector<16x1xf32>
    %6 = arith.addf %4, %5 : vector<16x1xf32>
    %7 = tpu.reciprocal %6 {approx = true} : vector<16x1xf32> -> vector<16x1xf32>
    %8 = vector.broadcast %4 : vector<16x1xf32> to vector<16x128xf32>
    %9 = arith.subf %0, %8 : vector<16x128xf32>
    %10 = vector.broadcast %7 : vector<16x1xf32> to vector<16x128xf32>
    %11 = arith.mulf %9, %10 : vector<16x128xf32>
    %c0_3 = arith.constant 0 : index
    %c0_4 = arith.constant 0 : index
    %12 = vector.load %arg2[%c0_3, %c0_4] : memref<1x128xf32, #tpu.memory_space<vmem>>, vector<1x128xf32>
    %13 = vector.broadcast %12 : vector<1x128xf32> to vector<16x128xf32>
    %14 = arith.mulf %11, %13 : vector<16x128xf32>
    %c0_5 = arith.constant 0 : index
    %c0_6 = arith.constant 0 : index
    %15 = vector.load %arg3[%c0_5, %c0_6] : memref<1x128xf32, #tpu.memory_space<vmem>>, vector<1x128xf32>
    %16 = vector.broadcast %15 : vector<1x128xf32> to vector<16x128xf32>
    %17 = arith.addf %14, %16 : vector<16x128xf32>
    %c0_7 = arith.constant 0 : index
    %c0_8 = arith.constant 0 : index
    %18 = vector.load %arg4[%c0_7, %c0_8] : memref<16x128xf32, #tpu.memory_space<vmem>>, vector<16x128xf32>
    tpu.vector_store %arg4[%c0_7, %c0_8], %17 {strides = array<i32>} : memref<16x128xf32, #tpu.memory_space<vmem>>, vector<16x128xf32>,
    return
  }
  func.func @transform_0(%arg0: i32) -> (i32, i32) {
    %c0_i32 = arith.constant 0 : i32
    %c0_i32_0 = arith.constant 0 : i32
    return %arg0, %c0_i32 : i32, i32
  }
  func.func @transform_1(%arg0: i32) -> (i32, i32) {
    %c0_i32 = arith.constant 0 : i32
    %c0_i32_0 = arith.constant 0 : i32
    %c0_i32_1 = arith.constant 0 : i32
    return %c0_i32, %c0_i32_0 : i32, i32
  }
  func.func @transform_2(%arg0: i32) -> (i32, i32) {
    %c0_i32 = arith.constant 0 : i32
    %c0_i32_0 = arith.constant 0 : i32
    %c0_i32_1 = arith.constant 0 : i32
    return %c0_i32, %c0_i32_0 : i32, i32
  }
  func.func @transform_3(%arg0: i32) -> (i32, i32) {
    %c0_i32 = arith.constant 0 : i32
    %c0_i32_0 = arith.constant 0 : i32
    return %arg0, %c0_i32 : i32, i32
  }
}

</mosaic_0001>

<bundles_post_ra>
// kernel: tpu_custom_call.1
= control target key start
LH: loop header
LB: loop body
LE: loop exit
PB: predicated region body
PF: predicated region fallthrough
CT: control target
= control target key end

     0   :  { %8 = vsyncpa [#allocation3], 0  ;;  %s200_s0 = inlined_call_operand.hbm [shape: f32[16,128], index: 0, kind: input, shape index: {}]   ;;  %s201_s1 = inlined_call_operand.vmem [shape: f32[1,128], index: 1, kind: input, shape index: {}]   ;;  %s202_s2 = inlined_call_operand.vmem [shape: f32[1,128], index: 2, kind: input, shape index: {}]   ;;  %s203_s3 = inlined_call_operand.hbm [shape: f32[16,128], index: 3, kind: output, shape index: {}]  }
   0x1   :  { %9 = vsyncpa [#allocation4], 0  ;;  %s140_s12 = smov [#allocation2]   ;;  %s92_s16 = scalar_lea.hbm %s200_s0, 256 }
   0x2   :  { %s15_s13 = sshll.u32 %s140_s12, 4  ;;  %p93_p0 = scmp.ne.s32.totalorder %s200_s0, %s92_s16  ;;  %s16_s13 = int_to_ptr.vmem [resolvable:$true] %s15_s13 }
   0x3   :  { %p96_p1 = scmp.lt.u32.totalorder %s92_s16, %s200_s0 }
   0x5   :  { %p98_p2 = pnand %p96_p1, %p93_p0 }
   0x7   :  { %101 = shalt.err (!%p98_p2)
}
   0x8   :  { %s102_s21 = scalar_lea.vmem %s16_s13, 256  ;;  %p107_p4 = scmp.lt.s32.totalorder %s16_s13, %s16_s13 }
   0x9   :  { %p103_p3 = scmp.ne.s32.totalorder %s16_s13, %s102_s21  ;;  %p108_p5 = scmp.lt.s32.totalorder %s102_s21, %s102_s21 }
   0xb   :  { %p109_p6 = por %p108_p5, %p107_p4 }
   0xd   :  { %p110_p7 = pnand %p109_p6, %p103_p3 }
   0xf   :  { %113 = shalt.err (!%p110_p7)
}
  0x10   :  { %s141_s22 = smov 128   ;;  %s142_s23 = smov 8  }
  0x11   :  { %21 = dma.hbm_to_vmem [thread:$0]  %s200_s0, 256, %s16_s13, [#allocation3], %s141_s22, %s141_s22, %s142_s23  }
  0x12   :  { %136 = dma.done.wait [#allocation3], 256  }
  0x13   :  { %137 = vsyncadd [#allocation3], 4294967040  ;;  %v29_v0 = vld [vmem:[#allocation2] sm:$0xff]  ;;  %v30_v1 = vld [vmem:[#allocation2 + $0x8] sm:$0xff]  ;;  %s143_s29 = smov [#allocation5]  }
  0x14   :  { %31 = vadd.xlane.f32.xlu0 %v29_v0  ;;  %v82_v10 = vld [vmem:[%s201_s1] ss:$0 sm:$0xff]  ;;  %s70_s30 = sshll.u32 %s143_s29, 4  ;;  %s71_s30 = int_to_ptr.vmem [resolvable:$true] %s70_s30 }
  0x15   :  { %v83_v12 = vld [vmem:[%s202_s2] ss:$0 sm:$0xff]  ;;  %s114_s4 = scalar_lea.vmem %s71_s30, 256  ;;  %p119_p9 = scmp.lt.s32.totalorder %s71_s30, %s71_s30 }
  0x16   :  { %p115_p8 = scmp.ne.s32.totalorder %s71_s30, %s114_s4  ;;  %p120_p10 = scmp.lt.s32.totalorder %s114_s4, %s114_s4 }
  0x18   :  { %33 = vadd.xlane.f32.xlu0 %v30_v1  ;;  %p121_p11 = por %p120_p10, %p119_p9 }
  0x1a   :  { %p122_p12 = pnand %p121_p11, %p115_p8 }
  0xa1   :  { %v32_v2 = vpop.xlane.xlu0 %31 }
  0xa2   :  { %v35_v3 = vmul.f32 0.0078125, %v32_v2 }
  0xa4   :  { %v37_v4 = vadd.f32 1e-09, %v35_v3  ;;  %v41_v8 = vsub.f32 %v29_v0, %v35_v3 }
  0xa5   :  { %v34_v5 = vpop.xlane.xlu0 %33 }
  0xa6   :  { %88 = vrcp.f32 %v37_v4  ;;  %v36_v6 = vmul.f32 0.0078125, %v34_v5 }
  0xa8   :  { %v38_v7 = vadd.f32 1e-09, %v36_v6  ;;  %v42_v14 = vsub.f32 %v30_v1, %v36_v6 }
  0xaa   :  { %90 = vrcp.f32 %v38_v7 }
  0xb0   :  { %v89_v9 = vpop.eup %88 }
  0xb1   :  { %v43_v11 = vmul.f32 %v89_v9, %v41_v8 }
  0xb3   :  { %v52_v13 = vmul.f32 %v82_v10, %v43_v11 }
  0xb4   :  { %v91_v15 = vpop.eup %90 }
  0xb5   :  { %v44_v16 = vmul.f32 %v91_v15, %v42_v14  ;;  %v61_v17 = vadd.f32 %v83_v12, %v52_v13 }
  0xb7   :  { %v53_v18 = vmul.f32 %v82_v10, %v44_v16  ;;  %63 = vst [vmem:[#allocation5] sm:$0xff] %v61_v17 }
  0xb9   :  { %v62_v19 = vadd.f32 %v83_v12, %v53_v18 }
  0xbb   :  { %64 = vst [vmem:[#allocation5 + $0x8] sm:$0xff] %v62_v19 }
  0xbc   :  { %125 = shalt.err (!%p122_p12)
}
  0xbd   :  { %s126_s5 = scalar_lea.hbm %s203_s3, 256 }
  0xbe   :  { %p127_p13 = scmp.ne.s32.totalorder %s203_s3, %s126_s5  ;;  %p130_p0 = scmp.lt.u32.totalorder %s126_s5, %s203_s3 }
  0xc0   :  { %p132_p1 = pnand %p130_p0, %p127_p13 }
  0xc2   :  { %135 = shalt.err (!%p132_p1)
}
  0xc3   :  { %76 = dma.vmem_to_hbm [thread:$0]  %s71_s30, 256, %s203_s3, [#allocation4], %s141_s22, %s141_s22, %s142_s23  }
  0xc4   :  { %138 = dma.done.wait [#allocation4], 256  }
  0xc5   :  { %139 = vsyncadd [#allocation4], 4294967040 }
  0xc6   :  { %80 = vsyncpa [#allocation3], 1 }
  0xc7   :  { %81 = vsyncpa [#allocation4], 1 }

</bundles_post_ra>
